<compile_context>
chip_gen: v6e
topology: v6e:2x2x1
jax: 0.10.0
libtpu: 0.0.40
codegen_flags: <defaults>
</compile_context>

<pallas_src>
import jax
import jax.numpy as jnp
from jax.experimental import pallas as pl
from jax.experimental.pallas import tpu as pltpu


# ---------------------------------------------------------------------------
# hardware queries (robust fallbacks so the wrapper never fails off-TPU paths)
# ---------------------------------------------------------------------------
def _device_kind():
    try:
        return jax.devices()[0].device_kind.lower()
    except Exception:
        return ""


def _vmem_capacity_bytes():
    try:
        return int(pltpu.get_tpu_info().vmem_capacity_bytes)
    except Exception:
        # v7x has 64 MiB per TensorCore; earlier gens 128 MiB.
        return (64 << 20) if "v7" in _device_kind() else (128 << 20)


def _has_bf16_vector_units():
    k = _device_kind()
    return ("v6" in k) or ("v7" in k)


def _round_up(v, m):
    return ((v + m - 1) // m) * m


# ---------------------------------------------------------------------------
# kernels
# ---------------------------------------------------------------------------
def _make_kernel(active, compute_dtype):
    use_f32 = compute_dtype == jnp.float32

    def kernel(x_ref, w_ref, o_ref):
        # x_ref: (Cin, ts), w_ref: (Cout, Cin), o_ref: (Cout, ts)
        if active:
            x = x_ref[...].astype(compute_dtype)
            # mish(x) = x * tanh(softplus(x)) = x * (t^2 + 2t)/(t^2 + 2t + 2), t = e^x.
            # Clamp the exponent: the unselected where-branch and any garbage lanes
            # of the ragged last tile stay finite. Lanes are independent in the
            # channel matmul and the ragged store is masked, so this is safe.
            t = jnp.exp(jnp.minimum(x, 20.0))
            u = t * (t + 2.0)
            d = u + 2.0
            if use_f32:
                # EUP approx reciprocal + one Newton-Raphson step on the VPU
                # instead of an exact divide queued behind exp on the EUP.
                r = pl.reciprocal(d, approx=True)
                r = r * (2.0 - d * r)
                ratio = u * r
            else:
                ratio = u / d
            act = jnp.where(x > 20.0, x, x * ratio)
            lhs = act.astype(w_ref.dtype)
        else:
            lhs = x_ref[...]
        o_ref[...] = jnp.dot(
            w_ref[...], lhs, preferred_element_type=jnp.float32
        ).astype(o_ref.dtype)

    return kernel


# ---------------------------------------------------------------------------
# tiling / VMEM budgeting
# ---------------------------------------------------------------------------
def _per_lane_bytes(Cin, Cout, itemsize, compute_itemsize, active):
    cin_p = _round_up(max(Cin, 1), 8)
    cout_p = _round_up(max(Cout, 1), 8)
    per_lane = 2 * (cin_p + cout_p) * itemsize      # double-buffered x / out blocks
    per_lane += cout_p * 4                          # f32 matmul result before cast
    if active:
        per_lane += 4 * cin_p * compute_itemsize    # mish temporaries (x, t, u, ratio)
    fixed = 2 * cout_p * cin_p * itemsize           # resident weight (double-buffered)
    return per_lane, fixed


def _choose_spatial_tile(S, per_lane, fixed, budget_bytes, max_tile=65536):
    avail = max(budget_bytes - fixed, 128 * per_lane)
    ts = min(int(avail // per_lane), max_tile)
    if ts >= S:
        return S
    return max(128, (ts // 128) * 128)


# ---------------------------------------------------------------------------
# wrapper
# ---------------------------------------------------------------------------
def basic_conv3d(x_ncdhw, weight, *, active=True):
    """x_ncdhw: (N, Cin, D, H, W); weight: (Cout, Cin, 1, 1, 1) -> (N, Cout, D, H, W)."""
    assert weight.shape[2:] == (1, 1, 1), "only kernel_size=1 / stride=1 / padding=0"
    N, Cin, D, H, W = x_ncdhw.shape
    Cout = weight.shape[0]
    assert weight.shape[1] == Cin
    S = D * H * W

    # Contiguous (free) reshapes -- no transpose, no extra HBM round trip.
    x3 = x_ncdhw.reshape(N, Cin, S)
    w2d = weight.reshape(Cout, Cin).astype(x_ncdhw.dtype)  # pre-cast once; stays resident

    dtype = x_ncdhw.dtype
    itemsize = jnp.dtype(dtype).itemsize
    # bf16 mish only where the VPU/EUP have bf16 paths (v6e/v7x); f32 elsewhere.
    compute_dtype = (
        jnp.bfloat16 if (dtype == jnp.bfloat16 and _has_bf16_vector_units()) else jnp.float32
    )
    compute_itemsize = jnp.dtype(compute_dtype).itemsize

    # Generation-aware VMEM budget (v7x ~32 MiB target, v5e/v6e ~48 MiB target).
    cap = _vmem_capacity_bytes()
    budget = min(cap // 2, 48 << 20)

    per_lane, fixed = _per_lane_bytes(Cin, Cout, itemsize, compute_itemsize, active)
    ts = _choose_spatial_tile(S, per_lane, fixed, budget)

    # Keep at least two grid steps so v7x's two TensorCores both get work
    # (also overlaps DMA with compute; one extra step is ~0.35 us elsewhere).
    if N * pl.cdiv(S, ts) < 2 and S >= 256:
        ts = max(128, _round_up(pl.cdiv(S, 2), 128))

    grid = (N, pl.cdiv(S, ts))

    # Actual footprint drives the compiler VMEM limit (with headroom), capped at physical.
    footprint = per_lane * ts + fixed
    vmem_limit = int(min(cap, max(footprint + (8 << 20), 32 << 20)))

    cost = pl.CostEstimate(
        flops=2 * N * S * Cin * Cout,
        transcendentals=(2 * N * S * Cin) if active else 0,  # exp + reciprocal
        bytes_accessed=(N * S * (Cin + Cout) + Cout * Cin) * itemsize,
    )

    kernel = _make_kernel(active, compute_dtype)

    out3 = pl.pallas_call(
        kernel,
        out_shape=jax.ShapeDtypeStruct((N, Cout, S), dtype),
        grid=grid,
        in_specs=[
            pl.BlockSpec((None, Cin, ts), lambda n, s: (n, 0, s)),  # x tile (batch squeezed)
            pl.BlockSpec((Cout, Cin), lambda n, s: (0, 0)),         # weight stays resident
        ],
        out_specs=pl.BlockSpec((None, Cout, ts), lambda n, s: (n, 0, s)),
        compiler_params=pltpu.CompilerParams(
            dimension_semantics=("parallel", "parallel"),
            vmem_limit_bytes=vmem_limit,
        ),
        cost_estimate=cost,
    )(x3, w2d)

    return out3.reshape(N, Cout, D, H, W)


# ---------------------------------------------------------------------------
# reference + tests
# ---------------------------------------------------------------------------
def _reference(x_ncdhw, weight, *, active=True):
    # Plain-JAX reference: (optional) Mish then 1x1x1 conv (channel matmul).
    x = x_ncdhw.astype(jnp.float32)
    if active:
        sp = jnp.log1p(jnp.exp(-jnp.abs(x))) + jnp.maximum(x, 0.0)
        x = x * jnp.tanh(sp)
    w2d = weight.reshape(weight.shape[0], weight.shape[1]).astype(jnp.float32)
    return jnp.einsum("ncdhw,oc->nodhw", x, w2d).astype(x_ncdhw.dtype)


if __name__ == "__main__":
    key = jax.random.PRNGKey(0)
    k_x, k_w = jax.random.split(key)

    N, Cin, Cout = 2, 4, 8
    D, H, W = 4, 8, 8

    x = jax.random.normal(k_x, (N, Cin, D, H, W), dtype=jnp.float32)
    # Shape matches nn.Conv3d(Cin, Cout, kernel_size=1, bias=False).weight
    weight = jax.random.normal(k_w, (Cout, Cin, 1, 1, 1), dtype=jnp.float32) * 0.1

    # active=True: fused Mish + 1x1x1 conv
    out = jax.block_until_ready(basic_conv3d(x, weight, active=True))
    ref = _reference(x, weight, active=True)
    assert out.shape == (N, Cout, D, H, W), out.shape
    assert jnp.allclose(out, ref, atol=1e-4, rtol=1e-4), float(jnp.max(jnp.abs(out - ref)))

    # active=False: plain 1x1x1 conv
    out_na = jax.block_until_ready(basic_conv3d(x, weight, active=False))
    ref_na = _reference(x, weight, active=False)
    assert jnp.allclose(out_na, ref_na, atol=1e-4, rtol=1e-4), float(
        jnp.max(jnp.abs(out_na - ref_na))
    )

    # bf16 model dtype: operands stay bf16 on the MXU, f32 accumulation;
    # mish runs in bf16 on v6e/v7x, f32 on older gens.
    xb = x.astype(jnp.bfloat16)
    wb = weight.astype(jnp.bfloat16)
    out_b = jax.block_until_ready(basic_conv3d(xb, wb, active=True))
    ref_b = _reference(xb, wb, active=True)
    assert out_b.dtype == jnp.bfloat16
    assert jnp.allclose(
        out_b.astype(jnp.float32), ref_b.astype(jnp.float32), atol=2e-2, rtol=2e-2
    ), float(jnp.max(jnp.abs(out_b.astype(jnp.float32) - ref_b.astype(jnp.float32))))

    # Larger spatial extent to exercise the budget-derived tiling / ragged last tile.
    xl = jax.random.normal(k_x, (1, Cin, 8, 20, 20), dtype=jnp.float32)  # S=3200 (not /128)
    out_l = jax.block_until_ready(basic_conv3d(xl, weight, active=True))
    ref_l = _reference(xl, weight, active=True)
    assert jnp.allclose(out_l, ref_l, atol=1e-4, rtol=1e-4), float(
        jnp.max(jnp.abs(out_l - ref_l))
    )

    print("KERNEL_OK")
</pallas_src>

<mosaic_0001>
module attributes {stable_mosaic.version = 11 : i64} {
  func.func @kernel(%arg0: i32, %arg1: i32, %arg2: memref<1x4x256xf32, #tpu.memory_space<vmem>>, %arg3: memref<8x4xf32, #tpu.memory_space<vmem>>, %arg4: memref<1x8x256xf32, #tpu.memory_space<vmem>>) attributes {dimension_semantics = [#tpu.dimension_semantics<parallel>, #tpu.dimension_semantics<parallel>], iteration_bounds = array<i64: 2, 1>, scalar_prefetch = 0 : i64, scratch_operands = 0 : i64, tpu.core_type = #tpu.core_type<tc>, window_params = [{transform_indices = @transform_0, window_bounds = array<i64: 1, 4, 256>}, {pipeline_mode = #tpu.pipeline_mode<synchronous>, transform_indices = @transform_1, window_bounds = array<i64: 8, 4>}, {transform_indices = @transform_2, window_bounds = array<i64: 1, 8, 256>}]} {
    %c0 = arith.constant 0 : index
    %c0_0 = arith.constant 0 : index
    %c0_1 = arith.constant 0 : index
    %0 = vector.load %arg2[%c0, %c0_0, %c0_1] : memref<1x4x256xf32, #tpu.memory_space<vmem>>, vector<1x4x256xf32>
    %1 = vector.shape_cast %0 : vector<1x4x256xf32> to vector<4x256xf32>
    %cst = arith.constant 2.000000e+01 : f32
    %2 = vector.broadcast %cst : f32 to vector<4x256xf32>
    %3 = arith.minimumf %1, %2 : vector<4x256xf32>
    %4 = math.exp %3 : vector<4x256xf32>
    %cst_2 = arith.constant 2.000000e+00 : f32
    %5 = vector.broadcast %cst_2 : f32 to vector<4x256xf32>
    %6 = arith.addf %4, %5 : vector<4x256xf32>
    %7 = arith.mulf %4, %6 : vector<4x256xf32>
    %cst_3 = arith.constant 2.000000e+00 : f32
    %8 = vector.broadcast %cst_3 : f32 to vector<4x256xf32>
    %9 = arith.addf %7, %8 : vector<4x256xf32>
    %10 = tpu.reciprocal %9 {approx = true} : vector<4x256xf32> -> vector<4x256xf32>
    %11 = arith.mulf %9, %10 : vector<4x256xf32>
    %cst_4 = arith.constant 2.000000e+00 : f32
    %12 = vector.broadcast %cst_4 : f32 to vector<4x256xf32>
    %13 = arith.subf %12, %11 : vector<4x256xf32>
    %14 = arith.mulf %10, %13 : vector<4x256xf32>
    %15 = arith.mulf %7, %14 : vector<4x256xf32>
    %cst_5 = arith.constant 2.000000e+01 : f32
    %16 = vector.broadcast %cst_5 : f32 to vector<4x256xf32>
    %17 = arith.cmpf ogt, %1, %16 : vector<4x256xf32>
    %18 = arith.mulf %1, %15 : vector<4x256xf32>
    %19 = arith.select %17, %1, %18 : vector<4x256xi1>, vector<4x256xf32>
    %c0_6 = arith.constant 0 : index
    %c0_7 = arith.constant 0 : index
    %20 = vector.load %arg3[%c0_6, %c0_7] : memref<8x4xf32, #tpu.memory_space<vmem>>, vector<8x4xf32>
    %cst_8 = arith.constant dense<0.000000e+00> : vector<8x256xf32>
    %21 = tpu.matmul %20, %19, %cst_8 {dimension_numbers = #tpu.dot_dimension_numbers<[1], [0], [0], [1], [0, 0, 1, 1], [], []>} : vector<8x4xf32>, vector<4x256xf32>, vector<8x256xf32> -> vector<8x256xf32>
    %c0_9 = arith.constant 0 : index
    %c0_10 = arith.constant 0 : index
    %c0_11 = arith.constant 0 : index
    %22 = vector.load %arg4[%c0_9, %c0_10, %c0_11] : memref<1x8x256xf32, #tpu.memory_space<vmem>>, vector<1x8x256xf32>
    %23 = vector.shape_cast %22 : vector<1x8x256xf32> to vector<8x256xf32>
    %24 = vector.shape_cast %21 : vector<8x256xf32> to vector<1x8x256xf32>
    tpu.vector_store %arg4[%c0_9, %c0_10, %c0_11], %24 {strides = array<i32>} : memref<1x8x256xf32, #tpu.memory_space<vmem>>, vector<1x8x256xf32>,
    return
  }
  func.func @transform_0(%arg0: i32, %arg1: i32) -> (i32, i32, i32) {
    %c0_i32 = arith.constant 0 : i32
    %c0_i32_0 = arith.constant 0 : i32
    return %arg0, %c0_i32, %arg1 : i32, i32, i32
  }
  func.func @transform_1(%arg0: i32, %arg1: i32) -> (i32, i32) {
    %c0_i32 = arith.constant 0 : i32
    %c0_i32_0 = arith.constant 0 : i32
    %c0_i32_1 = arith.constant 0 : i32
    return %c0_i32, %c0_i32_0 : i32, i32
  }
  func.func @transform_2(%arg0: i32, %arg1: i32) -> (i32, i32, i32) {
    %c0_i32 = arith.constant 0 : i32
    %c0_i32_0 = arith.constant 0 : i32
    return %arg0, %c0_i32, %arg1 : i32, i32, i32
  }
}

</mosaic_0001>

<bundles_post_ra>
// kernel: tpu_custom_call.1
= control target key start
LH: loop header
LB: loop body
LE: loop exit
PB: predicated region body
PF: predicated region fallthrough
CT: control target
= control target key end

     0   :  { %7 = vsyncpa [#allocation3], 0  ;;  %s740_s0 = inlined_call_operand.hbm [shape: f32[2,4,256], index: 0, kind: input, shape index: {}]   ;;  %s741_s1 = inlined_call_operand.vmem [shape: f32[8,4], index: 1, kind: input, shape index: {}]   ;;  %s742_s2 = inlined_call_operand.hbm [shape: f32[2,8,256], index: 2, kind: output, shape index: {}]  }
   0x1   :  { %9 = vsyncpa [#allocation3 + $0x1], 0 }
   0x2   :  { %10 = vsyncpa [#allocation4], 0 }
   0x3   :  { %12 = vsyncpa [#allocation4 + $0x1], 0  ;;  %s596_s9 = smov 0   ;;  %s598_s10 = smov 0  }
   0x4   :  { %s600_s11 = smov 0   ;;  %s602_s12 = smov 0  }
   0x5   :  { %s604_s13 = smov 0   ;;  %s606_s14 = smov 0  }
   0x6 LB: > { %s381_s15 = sadd.s32 4294967295, %s576_s14   ;;  %s382_s16 = sadd.s32 4294967294, %s576_s14   ;;  %s576_s14 = sphi %s606_s14, %s18_s14   ;;  %s572_s13 = sphi %s604_s13, %s754_s13   ;;  %s568_s12 = sphi %s602_s12, %s753_s12   ;;  %s564_s11 = sphi %s600_s11, %s752_s11   ;;  %s560_s10 = sphi %s598_s10, %s751_s10   ;;  %s556_s9 = sphi %s596_s9, %s750_s9  }
   0x7   : > { %s30_s17 = sadd.s32 1, %s572_s13  ;;  %s39_s18 = sadd.s32 1, %s564_s11 }
   0x8   : > { %p32_p0 = scmp.ge.s32.totalorder %s30_s17, 2  ;;  %p46_p1 = scmp.ne.s32.totalorder %s564_s11, %s560_s10 }
   0x9   : > { %p47_p2 = scmp.eq.s32.totalorder %s576_s14, 0  ;;  %p52_p3 = scmp.ne.s32.totalorder %s560_s10, %s556_s9 }
   0xa   : > { %s756_s17 = smov (%p32_p0, %s30_s17), 0  ;;  %p53_p5 = scmp.eq.s32.totalorder %s381_s15, 0 }
   0xb   : > { %p637_p4 = por %p47_p2, %p46_p1  ;;  %s34_s20 = ssub.s32 %s572_s13, %s756_s17 }
   0xc   : > { %p99_p6 = scmp.eq.s32.totalorder %s381_s15, 1  ;;  %p37_p7 = scmp.eq.s32.totalorder %s34_s20, 0 }
   0xd   : > { %p643_p8 = por %p53_p5, %p52_p3  ;;  %p105_p10 = scmp.eq.s32.totalorder %s382_s16, 1 }
   0xe   : > { %p647_p9 = por %p99_p6, %p46_p1  ;;  %p413_p13 = scmp.lt.s32.totalorder %s576_s14, 2 }
   0xf   : > { %s652_s23 = scalar_select %p37_p7, %s564_s11, %s39_s18  }
  0x10   : > { %p654_p11 = por %p105_p10, %p52_p3  ;;  %s128_s25 = sand.u32 1, %s564_s11  }
  0x11   : > { %s385_s26 = sshll.u32 %s128_s25, 3  ;;  %s399_s27 = sshll.u32 %s572_s13, 7 }
  0x12   : > { %s746_s24 = scalar_select %p654_p11, 1, 0 }
  0x13   : > { %s140_s30 = scalar_lea.hbm %s740_s0, %s399_s27  ;;  %s132_s3 = scalar_lea.vmem [#allocation2], %s385_s26 }
  0x14   : > { %s142_s4 = sshll.u32 %s132_s3, 4  ;;  %p667_p0 = pnand %p413_p13, %p637_p4  ;;  %s143_s4 = int_to_ptr.vmem [resolvable:$true] %s142_s4 }
  0x15   : > { %p388_p1 = scmp.ge.s32.totalorder %s576_s14, 1  ;;  %p147_p2 = scmp.lt.s32.totalorder %s576_s14, 3 }
  0x16   : > { %s129_s6 = scalar_lea.sflag [#allocation3], %s128_s25  ;;  %p470_p3 = pneg %p667_p0 }
  0x17   : > { %s481_s7 = scalar_lea.vmem %s143_s4, 128  ;;  %s578_s8 = smov [#allocation2]  }
  0x18   : > { %p482_p5 = scmp.ne.s32.totalorder %s143_s4, %s481_s7  ;;  %s486_s15 = sshll.u32 %s578_s8, 4  ;;  %s487_s15 = int_to_ptr.vmem [resolvable:$false] %s486_s15 }
  0x19   : > { %s488_s16 = scalar_lea.vmem %s487_s15, 256  ;;  %p489_p10 = scmp.lt.s32.totalorder %s143_s4, %s487_s15 }
  0x1a   : > { %p484_p6 = pnand %p482_p5, %p470_p3  ;;  %p490_p12 = scmp.lt.s32.totalorder %s488_s16, %s481_s7 }
  0x1c   : > { %p485_p7 = pneg %p484_p6  ;;  %p491_p4 = por %p490_p12, %p489_p10 }
  0x1e   : > { %p492_p13 = pnand %p491_p4, %p485_p7 }
  0x20   : > { %495 = shalt.err (!%p492_p13)
}
  0x21   : > { %408 = dma.hbm_to_vmem [thread:$0]  (!%p667_p0), %s140_s30, 128, %s143_s4, %s129_s6  }
  0x22   : > { %p148_p11 = pnand %p388_p1, %p147_p2 }
  0x23   : > { %s682_s18 = sand.u32 (!%p148_p11), 1, %s560_s10  }
  0x24   : > { %151 = sbr.rel (%p148_p11) target bundleno = 304 (0x130), region = 28  ;;  %s389_s19 = sshll.u32 (!%p148_p11), %s682_s18, 3 }
  0x25   : > { %s154_s20 = scalar_lea.sflag (!%p148_p11), [#allocation3], %s682_s18  ;;  %s157_s25 = scalar_lea.vmem (!%p148_p11), [#allocation2], %s389_s19 }
  0x29   : > { %547 = dma.done.wait (%p643_p8), %s154_s20, 128  }
  0x2a   : > { %549 = vsyncadd (%p643_p8), %s154_s20, 4294967168  ;;  %v579_v0 = vmov 0.0   ;;  %v180_v1 = vld [vmem:[%s157_s25] sm:$0xff]  ;;  %vm202_vm1 = vcmask 1043456   ;;  %vm198_vm2 = vcmask 31744   ;;  %s390_s27 = sshll.u32 %s682_s18, 4 }
  0x2b   : > { %271 = vmatprep.mubr.f32.mxu0 %v579_v0  ;;  %v181_v2 = vmin.f32 %v180_v1, 20.0  ;;  %vm192_vm0 = vcmp.gt.f32.partialorder %v180_v1, 20.0  ;;  %v195_v16 = vld [vmem:[%s741_s1] sm:$0xff]  ;;  %s177_s28 = scalar_lea.vmem [#allocation5], %s390_s27  ;;  %s400_s30 = sshll.u32 %s568_s12, 8 }
  0x2c   : > { %s297_s29 = sshll.u32 %s177_s28, 4  ;;  %s295_s5 = scalar_lea.hbm %s742_s2, %s400_s30  ;;  %s695_s29 = int_to_ptr.vmem [resolvable:$true] %s297_s29 }
  0x2d   : > { %v182_v3 = vmul.f32 1.442695, %v181_v2  ;;  %s281_s6 = scalar_lea.sflag [#allocation4], %s682_s18  ;;  %s496_s7 = scalar_lea.vmem %s695_s29, 256 }
  0x2e   : > { %p497_p8 = scmp.ne.s32.totalorder %s695_s29, %s496_s7  ;;  %s580_s12 = smov [#allocation5]  }
  0x2f   : > { %464 = vpow2.f32 %v182_v3  ;;  %s500_s8 = sshll.u32 %s580_s12, 4  ;;  %s501_s8 = int_to_ptr.vmem [resolvable:$false] %s500_s8 }
  0x30   : > { %p498_p11 = pnand %p497_p8, %p647_p9  ;;  %s502_s15 = scalar_lea.vmem %s501_s8, 512 }
  0x31   : > { %p503_p0 = scmp.lt.s32.totalorder %s695_s29, %s501_s8  ;;  %p504_p1 = scmp.lt.s32.totalorder %s502_s15, %s496_s7 }
  0x32   : > { %p499_p12 = pneg %p498_p11 }
  0x33   : > { %p505_p2 = por %p504_p1, %p503_p0 }
  0x35   : > { %p506_p3 = pnand %p505_p2, %p499_p12 }
  0x3c   : > { %v465_v4 = vpop.eup %464 }
  0x3d   : > { %v184_v5 = vadd.f32 2.0, %v465_v4 }
  0x3f   : > { %v185_v6 = vmul.f32 %v465_v4, %v184_v5 }
  0x41   : > { %v186_v7 = vadd.f32 2.0, %v185_v6 }
  0x43   : > { %466 = vrcp.f32 %v186_v7 }
  0x50   : > { %v467_v8 = vpop.eup %466 }
  0x51   : > { %v188_v9 = vmul.f32 %v467_v8, %v186_v7 }
  0x53   : > { %v189_v10 = vsub.f32 2.0, %v188_v9 }
  0x55   : > { %v190_v11 = vmul.f32 %v467_v8, %v189_v10 }
  0x57   : > { %v191_v12 = vmul.f32 %v190_v11, %v185_v6 }
  0x59   : > { %v193_v13 = vmul.f32 %v191_v12, %v180_v1 }
  0x5b   : > { %v194_v14 = vsel %vm192_vm0, %v180_v1, %v193_v13 }
  0x5c   : > { %v197_v15 = vcombine.high %v194_v14, %v194_v14 }
  0x5e   : > { %391 = vmatprep.subr.msk.mxu0 %vm202_vm1, %v197_v15 }
  0x5f   : > { %392 = vmatpush1.msk.msra.mxu0 %vm202_vm1, %v194_v14 }
  0x60   : > { %393 = vmatmul.mubr.msk.f32.vlgmr.msra.gmra.mxu0 %vm198_vm2, %v195_v16 }
 0x120   : > { %v273_v17 = vpop.f32.mrf.mxu0 }
 0x121   : > { %278 = vst [vmem:[%s177_s28] sm:$0xff] %v273_v17 }
 0x122   : > { %v275_v18 = vpop.f32.mrf.mxu0 }
 0x123   : > { %279 = vst [vmem:[%s177_s28 + $0x8] sm:$0xff] %v275_v18 }
 0x124   : > { %509 = shalt.err (!%p506_p3)
}
 0x125   : > { %s510_s16 = scalar_lea.hbm %s295_s5, 256  ;;  %s514_s20 = scalar_lea.hbm %s742_s2, 512 }
 0x126   : > { %p511_p5 = scmp.ne.s32.totalorder %s295_s5, %s510_s16  ;;  %p515_p10 = scmp.lt.s32.totalorder %s295_s5, %s742_s2 }
 0x127   : > { %p516_p4 = scmp.lt.s32.totalorder %s514_s20, %s510_s16 }
 0x128   : > { %p512_p6 = pnand %p511_p5, %p647_p9 }
 0x129   : > { %p517_p13 = por %p516_p4, %p515_p10 }
 0x12a   : > { %p513_p7 = pneg %p512_p6 }
 0x12c   : > { %p518_p8 = pnand %p517_p13, %p513_p7 }
 0x12e   : > { %521 = shalt.err (!%p518_p8)
}
 0x12f   : > { %403 = dma.vmem_to_hbm [thread:$0]  (%p647_p9), %s695_s29, 256, %s295_s5, %s281_s6  }
 0x130 PF: > { %s309_s26 = sand.u32 1, %s556_s9   ;;  %p748_p11 = scmp.ne.s32.totalorder %s746_s24, 0 }
 0x131   : > { %p749_p12 = scmp.ge.s32.totalorder %s576_s14, 2  ;;  %s310_s27 = scalar_lea.sflag [#allocation4], %s309_s26 }
 0x133   : > { %p410_p0 = pnand %p749_p12, %p748_p11 }
 0x135   : > { %p411_p1 = pneg %p410_p0 }
 0x137   : > { %551 = dma.done.wait (%p411_p1), %s310_s27, 256  }
 0x138   : > { %553 = vsyncadd (%p411_p1), %s310_s27, 4294967040  ;;  %s18_s14 = sadd.s32 1, %s576_s14   ;;  %s750_s9 = smov %s560_s10 }
 0x139   : > { %p15_p2 = scmp.ge.s32.totalorder %s18_s14, 4   ;;  %s751_s10 = smov %s564_s11 }
 0x13a   : > { %s752_s11 = smov %s652_s23  ;;  %s753_s12 = smov %s572_s13 }
 0x13b   : > { %s754_s13 = smov %s756_s17  ;;  %17 = sbr.rel (!%p15_p2) target bundleno = 6 (0x6), region = 73 }
 0x140   :  { %315 = vsyncpa [#allocation3], 1 }
 0x141   :  { %317 = vsyncpa [#allocation3 + $0x1], 1 }
 0x142   :  { %318 = vsyncpa [#allocation4], 1 }
 0x143   :  { %320 = vsyncpa [#allocation4 + $0x1], 1 }

</bundles_post_ra>
